<compile_context>
chip_gen: v5e
topology: v5e:2x2
jax: 0.10.0
libtpu: 0.0.40
codegen_flags: <defaults>
</compile_context>

<pallas_src>
import functools

import jax
import jax.numpy as jnp
from jax.experimental import pallas as pl
from jax.experimental.pallas import tpu as pltpu


def _round_up(n, m):
    return ((n + m - 1) // m) * m


def _moe_kernel(x_ref, w_ref, b_ref, sel_ref, red_ref, o_ref, *, n_exp_pad):
    x = x_ref[...]                                                   # [TB, D_in]

    # Single fused MXU matmul: expert outputs + gating logits, lane-dense slab.
    fused = jnp.dot(x, w_ref[...], preferred_element_type=jnp.float32)
    fused = fused + b_ref[...]                                       # [TB, N_tot]

    # Full-lane-group softmax over the gate block.  Pad columns carry bias
    # -1e30 (zero weights), so they contribute exactly 0 after exp.
    logits = fused[:, n_exp_pad:]                                    # [TB, n_gate_pad]
    m = jnp.max(logits, axis=-1, keepdims=True)
    e = jnp.exp(logits - m)
    gates = e / jnp.sum(e, axis=-1, keepdims=True)                   # [TB, n_gate_pad]

    # Lane-group aligned expert slab (padded columns are exactly zero).
    expert_slab = fused[:, :n_exp_pad]                               # [TB, n_exp_pad]

    # Replicate gate_i over its expert's D_out lanes (one full-K MXU pass),
    # multiply, then weighted-sum the E lane-groups into a 128-padded output.
    gates_full = jnp.dot(gates, sel_ref[...],
                         preferred_element_type=jnp.float32)         # [TB, n_exp_pad]
    weighted = expert_slab * gates_full
    out = jnp.dot(weighted, red_ref[...],
                  preferred_element_type=jnp.float32)                # [TB, d_out_pad]
    o_ref[...] = out.astype(o_ref.dtype)


def prepare_moe_params(wg, bg, we, be):
    """Pack weights once (call at parameter-setup time, not per forward).

    wg: [D_in, E]; bg: [E] or [1, E]; we: [E, D_in, D_out]; be: [E, D_out].
    Returns (w_all, b_all, sel, red).
    """
    D_in, E = wg.shape
    D_out = we.shape[2]
    n_exp = E * D_out
    n_exp_pad = _round_up(n_exp, 128)       # expert slab, lane-group aligned
    n_gate_pad = _round_up(E, 128)          # gating block, lane-group aligned
    d_out_pad = _round_up(D_out, 128)       # lane-dense output

    neg = jnp.float32(-1e30)

    # Fused weight / bias:  [ We_0 | ... | We_{E-1} | 0 | Wg | 0 ]
    w_exp = jnp.transpose(we, (1, 0, 2)).reshape(D_in, n_exp)        # [D_in, E*D_out]
    w_all = jnp.concatenate([
        w_exp,
        jnp.zeros((D_in, n_exp_pad - n_exp), jnp.float32),
        wg,
        jnp.zeros((D_in, n_gate_pad - E), jnp.float32),
    ], axis=1)                                                       # [D_in, N_tot]
    b_all = jnp.concatenate([
        be.reshape(n_exp),
        jnp.zeros((n_exp_pad - n_exp,), jnp.float32),
        bg.reshape(E),
        jnp.full((n_gate_pad - E,), neg, jnp.float32),               # mask for softmax
    ])[None, :]                                                      # [1, N_tot]

    # SEL [n_gate_pad, n_exp_pad]: gate g -> expert g's D_out lanes (one-hot).
    g = jnp.arange(n_gate_pad)[:, None]
    c = jnp.arange(n_exp_pad)[None, :]
    sel = ((g < E) & (c < n_exp) & ((c // D_out) == g)).astype(jnp.float32)

    # RED [n_exp_pad, d_out_pad]: sum the E expert lane-groups into D_out lanes.
    r = jnp.arange(n_exp_pad)[:, None]
    o = jnp.arange(d_out_pad)[None, :]
    red = ((r < n_exp) & (o < D_out) & ((r % D_out) == o)).astype(jnp.float32)

    return w_all, b_all, sel, red


def moe_forward(x, w_all, b_all, sel, red, d_out, *, block_b_cap=512):
    """x: [B, D_in] -> [B, d_out]."""
    B, D_in = x.shape
    n_tot = w_all.shape[1]
    n_gate_pad, n_exp_pad = sel.shape
    d_out_pad = red.shape[1]

    # Batch tiling: one big M tile (whole batch) for small B, capped tiles for
    # large B.  Even grid lengths at large B keep both v7x TCs busy.
    B8 = _round_up(B, 8)
    block_b = min(block_b_cap, B8)
    B_pad = _round_up(B8, block_b)
    if B_pad != B:
        x = jnp.pad(x, ((0, B_pad - B), (0, 0)))
    grid = (B_pad // block_b,)

    # Explicit VMEM budget (resident constants are double-buffered by default).
    itemsize = 4
    resident = (D_in * n_tot + n_tot
                + n_gate_pad * n_exp_pad + n_exp_pad * d_out_pad) * itemsize
    per_step = (2 * block_b * D_in + 2 * block_b * d_out_pad
                + 4 * block_b * n_tot) * itemsize
    vmem_limit = int(min(max(2 * resident + per_step, 32 << 20), 64 << 20))

    kernel = functools.partial(_moe_kernel, n_exp_pad=n_exp_pad)
    out = pl.pallas_call(
        kernel,
        out_shape=jax.ShapeDtypeStruct((B_pad, d_out_pad), jnp.float32),
        grid=grid,
        in_specs=[
            pl.BlockSpec((block_b, D_in), lambda b: (b, 0)),
            pl.BlockSpec((D_in, n_tot), lambda b: (0, 0)),
            pl.BlockSpec((1, n_tot), lambda b: (0, 0)),
            pl.BlockSpec((n_gate_pad, n_exp_pad), lambda b: (0, 0)),
            pl.BlockSpec((n_exp_pad, d_out_pad), lambda b: (0, 0)),
        ],
        out_specs=pl.BlockSpec((block_b, d_out_pad), lambda b: (b, 0)),
        compiler_params=pltpu.CompilerParams(
            dimension_semantics=("parallel",),
            vmem_limit_bytes=vmem_limit),
    )(x, w_all, b_all, sel, red)
    return out[:B, :d_out]


# ---------------- parameter setup (plain JAX glue) ----------------

def _linear_init(key, fan_in, fan_out):
    """torch.nn.Linear-style init: U(-1/sqrt(fan_in), 1/sqrt(fan_in))."""
    kw, kb = jax.random.split(key)
    bound = 1.0 / jnp.sqrt(fan_in)
    w = jax.random.uniform(kw, (fan_in, fan_out), jnp.float32, -bound, bound)
    b = jax.random.uniform(kb, (fan_out,), jnp.float32, -bound, bound)
    return w, b


def _prune_l1_unstructured(w, amount=0.4):
    """Zero exactly the k = round(amount*n) smallest-|w| entries
    (matches torch.nn.utils.prune.l1_unstructured's exact-k behavior)."""
    flat = w.ravel()
    k = int(round(amount * flat.size))
    if k == 0:
        return w
    idx = jnp.argsort(jnp.abs(flat))[:k]
    flat = flat.at[idx].set(0.0)
    return flat.reshape(w.shape)


def _reference(x, wg, bg, we, be):
    logits = x @ wg + bg                                             # [B, E]
    gates = jax.nn.softmax(logits, axis=-1)
    outs = jnp.einsum("bd,edo->ebo", x, we) + be[:, None, :]         # [E, B, D_out]
    return jnp.sum(outs * gates.T[:, :, None], axis=0)


if __name__ == "__main__":
    B, D_in, D_out, E = 16, 32, 32, 4

    key = jax.random.PRNGKey(0)
    k_x, k_g, *k_experts = jax.random.split(key, 2 + E)

    x = jax.random.normal(k_x, (B, D_in), jnp.float32)

    # Gating Linear(D_in -> E), pruned.
    wg, bg = _linear_init(k_g, D_in, E)
    wg = _prune_l1_unstructured(wg, 0.4)

    # E expert Linears(D_in -> D_out), each pruned, stacked.
    we_list, be_list = [], []
    for ke in k_experts:
        w, b = _linear_init(ke, D_in, D_out)
        we_list.append(_prune_l1_unstructured(w, 0.4))
        be_list.append(b)
    we = jnp.stack(we_list, axis=0)                                  # [E, D_in, D_out]
    be = jnp.stack(be_list, axis=0)                                  # [E, D_out]

    # Pack weights ONCE (hoisted out of the per-forward path).
    w_all, b_all, sel, red = prepare_moe_params(wg, bg, we, be)

    out = moe_forward(x, w_all, b_all, sel, red, D_out)
    out = jax.block_until_ready(out)

    ref = _reference(x, wg, bg[None, :], we, be)
    assert out.shape == (B, D_out)
    assert jnp.allclose(out, ref, atol=1e-5, rtol=1e-5), "mismatch vs reference"

    print("KERNEL_OK")
</pallas_src>

<mosaic_0001>
module attributes {stable_mosaic.version = 11 : i64} {
  func.func @_moe_kernel(%arg0: i32, %arg1: memref<16x32xf32, #tpu.memory_space<vmem>>, %arg2: memref<32x256xf32, #tpu.memory_space<vmem>>, %arg3: memref<1x256xf32, #tpu.memory_space<vmem>>, %arg4: memref<128x128xf32, #tpu.memory_space<vmem>>, %arg5: memref<128x128xf32, #tpu.memory_space<vmem>>, %arg6: memref<16x128xf32, #tpu.memory_space<vmem>>) attributes {dimension_semantics = [#tpu.dimension_semantics<parallel>], iteration_bounds = array<i64: 1>, scalar_prefetch = 0 : i64, scratch_operands = 0 : i64, tpu.core_type = #tpu.core_type<tc>, window_params = [{transform_indices = @transform_0, window_bounds = array<i64: 16, 32>}, {pipeline_mode = #tpu.pipeline_mode<synchronous>, transform_indices = @transform_1, window_bounds = array<i64: 32, 256>}, {pipeline_mode = #tpu.pipeline_mode<synchronous>, transform_indices = @transform_2, window_bounds = array<i64: 1, 256>}, {pipeline_mode = #tpu.pipeline_mode<synchronous>, transform_indices = @transform_3, window_bounds = array<i64: 128, 128>}, {pipeline_mode = #tpu.pipeline_mode<synchronous>, transform_indices = @transform_4, window_bounds = array<i64: 128, 128>}, {transform_indices = @transform_5, window_bounds = array<i64: 16, 128>}]} {
    %c0 = arith.constant 0 : index
    %c0_0 = arith.constant 0 : index
    %0 = vector.load %arg1[%c0, %c0_0] : memref<16x32xf32, #tpu.memory_space<vmem>>, vector<16x32xf32>
    %c0_1 = arith.constant 0 : index
    %c0_2 = arith.constant 0 : index
    %1 = vector.load %arg2[%c0_1, %c0_2] : memref<32x256xf32, #tpu.memory_space<vmem>>, vector<32x256xf32>
    %cst = arith.constant dense<0.000000e+00> : vector<16x256xf32>
    %2 = tpu.matmul %0, %1, %cst {dimension_numbers = #tpu.dot_dimension_numbers<[1], [0], [0], [1], [0, 0, 1, 1], [], []>} : vector<16x32xf32>, vector<32x256xf32>, vector<16x256xf32> -> vector<16x256xf32>
    %c0_3 = arith.constant 0 : index
    %c0_4 = arith.constant 0 : index
    %3 = vector.load %arg3[%c0_3, %c0_4] : memref<1x256xf32, #tpu.memory_space<vmem>>, vector<1x256xf32>
    %4 = vector.broadcast %3 : vector<1x256xf32> to vector<16x256xf32>
    %5 = arith.addf %2, %4 : vector<16x256xf32>
    %6 = vector.extract_strided_slice %5 {offsets = [0, 128], sizes = [16, 128], strides = [1, 1]} : vector<16x256xf32> to vector<16x128xf32>
    %cst_5 = arith.constant dense<0xFF800000> : vector<16xf32>
    %7 = vector.multi_reduction <maximumf>, %6, %cst_5 [1] : vector<16x128xf32> to vector<16xf32>
    %8 = vector.shape_cast %7 : vector<16xf32> to vector<16x1xf32>
    %9 = vector.broadcast %8 : vector<16x1xf32> to vector<16x128xf32>
    %10 = arith.subf %6, %9 : vector<16x128xf32>
    %11 = math.exp %10 : vector<16x128xf32>
    %cst_6 = arith.constant dense<0.000000e+00> : vector<16xf32>
    %12 = vector.multi_reduction <add>, %11, %cst_6 [1] : vector<16x128xf32> to vector<16xf32>
    %13 = vector.shape_cast %12 : vector<16xf32> to vector<16x1xf32>
    %14 = vector.broadcast %13 : vector<16x1xf32> to vector<16x128xf32>
    %15 = arith.divf %11, %14 : vector<16x128xf32>
    %16 = vector.extract_strided_slice %5 {offsets = [0, 0], sizes = [16, 128], strides = [1, 1]} : vector<16x256xf32> to vector<16x128xf32>
    %c0_7 = arith.constant 0 : index
    %c0_8 = arith.constant 0 : index
    %17 = vector.load %arg4[%c0_7, %c0_8] : memref<128x128xf32, #tpu.memory_space<vmem>>, vector<128x128xf32>
    %cst_9 = arith.constant dense<0.000000e+00> : vector<16x128xf32>
    %18 = tpu.matmul %15, %17, %cst_9 {dimension_numbers = #tpu.dot_dimension_numbers<[1], [0], [0], [1], [0, 0, 1, 1], [], []>} : vector<16x128xf32>, vector<128x128xf32>, vector<16x128xf32> -> vector<16x128xf32>
    %19 = arith.mulf %16, %18 : vector<16x128xf32>
    %c0_10 = arith.constant 0 : index
    %c0_11 = arith.constant 0 : index
    %20 = vector.load %arg5[%c0_10, %c0_11] : memref<128x128xf32, #tpu.memory_space<vmem>>, vector<128x128xf32>
    %cst_12 = arith.constant dense<0.000000e+00> : vector<16x128xf32>
    %21 = tpu.matmul %19, %20, %cst_12 {dimension_numbers = #tpu.dot_dimension_numbers<[1], [0], [0], [1], [0, 0, 1, 1], [], []>} : vector<16x128xf32>, vector<128x128xf32>, vector<16x128xf32> -> vector<16x128xf32>
    %c0_13 = arith.constant 0 : index
    %c0_14 = arith.constant 0 : index
    %22 = vector.load %arg6[%c0_13, %c0_14] : memref<16x128xf32, #tpu.memory_space<vmem>>, vector<16x128xf32>
    tpu.vector_store %arg6[%c0_13, %c0_14], %21 {strides = array<i32>} : memref<16x128xf32, #tpu.memory_space<vmem>>, vector<16x128xf32>,
    return
  }
  func.func @transform_0(%arg0: i32) -> (i32, i32) {
    %c0_i32 = arith.constant 0 : i32
    %c0_i32_0 = arith.constant 0 : i32
    return %arg0, %c0_i32 : i32, i32
  }
  func.func @transform_1(%arg0: i32) -> (i32, i32) {
    %c0_i32 = arith.constant 0 : i32
    %c0_i32_0 = arith.constant 0 : i32
    %c0_i32_1 = arith.constant 0 : i32
    return %c0_i32, %c0_i32_0 : i32, i32
  }
  func.func @transform_2(%arg0: i32) -> (i32, i32) {
    %c0_i32 = arith.constant 0 : i32
    %c0_i32_0 = arith.constant 0 : i32
    %c0_i32_1 = arith.constant 0 : i32
    return %c0_i32, %c0_i32_0 : i32, i32
  }
  func.func @transform_3(%arg0: i32) -> (i32, i32) {
    %c0_i32 = arith.constant 0 : i32
    %c0_i32_0 = arith.constant 0 : i32
    %c0_i32_1 = arith.constant 0 : i32
    return %c0_i32, %c0_i32_0 : i32, i32
  }
  func.func @transform_4(%arg0: i32) -> (i32, i32) {
    %c0_i32 = arith.constant 0 : i32
    %c0_i32_0 = arith.constant 0 : i32
    %c0_i32_1 = arith.constant 0 : i32
    return %c0_i32, %c0_i32_0 : i32, i32
  }
  func.func @transform_5(%arg0: i32) -> (i32, i32) {
    %c0_i32 = arith.constant 0 : i32
    %c0_i32_0 = arith.constant 0 : i32
    return %arg0, %c0_i32 : i32, i32
  }
}

</mosaic_0001>

<bundles_post_ra>
// kernel: tpu_custom_call.1
= control target key start
LH: loop header
LB: loop body
LE: loop exit
PB: predicated region body
PF: predicated region fallthrough
CT: control target
= control target key end

     0   :  { %10 = vsyncpa [#allocation3], 0  ;;  %s581_s0 = inlined_call_operand.hbm [shape: f32[16,32], index: 0, kind: input, shape index: {}]   ;;  %s582_s1 = inlined_call_operand.hbm [shape: f32[32,256], index: 1, kind: input, shape index: {}]   ;;  %s583_s2 = inlined_call_operand.hbm [shape: f32[1,256], index: 2, kind: input, shape index: {}]   ;;  %s584_s3 = inlined_call_operand.hbm [shape: f32[128,128], index: 3, kind: input, shape index: {}]   ;;  %s585_s4 = inlined_call_operand.hbm [shape: f32[128,128], index: 4, kind: input, shape index: {}]   ;;  %s586_s5 = inlined_call_operand.hbm [shape: f32[16,128], index: 5, kind: output, shape index: {}]  }
   0x1   :  { %11 = vsyncpa [#allocation6], 0 }
   0x2   :  { %12 = vsyncpa [#allocation9], 0  ;;  %s31_s20 = sshll.u32 %s582_s1, 4  ;;  %s32_s20 = int_to_ptr.hbm [resolvable:$true] %s31_s20 }
   0x3   :  { %13 = vsyncpa [#allocation4], 0  ;;  %s487_s21 = smov [#allocation5]   ;;  %s488_s23 = smov 256  }
   0x4   :  { %s33_s22 = sshll.u32 %s487_s21, 4  ;;  %s489_s24 = smov 16   ;;  %s34_s22 = int_to_ptr.vmem [resolvable:$true] %s33_s22 }
   0x5   :  { %39 = dma.hbm_to_vmem [thread:$0]  %s32_s20, 1024, %s34_s22, [#allocation6], %s488_s23, %s488_s23, %s489_s24  }
   0x6   :  { %s55_s27 = sshll.u32 %s584_s3, 4  ;;  %s490_s28 = smov [#allocation8]   ;;  %s56_s27 = int_to_ptr.hbm [resolvable:$true] %s55_s27 }
   0x7   :  { %s57_s29 = sshll.u32 %s490_s28, 4  ;;  %s18_s7 = sshll.u32 %s581_s0, 4  ;;  %s58_s29 = int_to_ptr.vmem [resolvable:$true] %s57_s29  ;;  %s19_s7 = int_to_ptr.hbm [resolvable:$true] %s18_s7 }
   0x8   :  { %s491_s1 = smov 128   ;;  %s492_s8 = smov 8  }
   0x9   :  { %63 = dma.hbm_to_vmem [thread:$0]  %s56_s27, 2048, %s58_s29, [#allocation9], %s491_s1, %s491_s1, %s492_s8  }
   0xa   :  { %s45_s11 = sshll.u32 %s583_s2, 4  ;;  %s493_s3 = smov [#allocation2]   ;;  %s46_s11 = int_to_ptr.hbm [resolvable:$true] %s45_s11 }
   0xb   :  { %s20_s12 = sshll.u32 %s493_s3, 4  ;;  %s494_s0 = smov [#allocation7]   ;;  %s21_s12 = int_to_ptr.vmem [resolvable:$true] %s20_s12 }
   0xc   :  { %26 = dma.hbm_to_vmem [thread:$0]  %s19_s7, 256, %s21_s12, [#allocation3], %s491_s1, %s491_s1, %s492_s8  }
   0xd   :  { %s47_s13 = sshll.u32 %s494_s0, 4  ;;  %s68_s16 = sshll.u32 %s585_s4, 4  ;;  %s48_s13 = int_to_ptr.vmem [resolvable:$true] %s47_s13  ;;  %s69_s16 = int_to_ptr.hbm [resolvable:$true] %s68_s16 }
   0xe   :  { %50 = dma.hbm_to_vmem [thread:$0]  %s46_s11, 32, %s48_s13, [#allocation6]  }
   0xf   :  { %s495_s17 = smov [#allocation10]  }
  0x10   :  { %s70_s18 = sshll.u32 %s495_s17, 4  ;;  %s71_s18 = int_to_ptr.vmem [resolvable:$true] %s70_s18 }
  0x11   :  { %76 = dma.hbm_to_vmem [thread:$0]  %s69_s16, 2048, %s71_s18, [#allocation9], %s491_s1, %s491_s1, %s492_s8  }
  0x12   :  { %479 = dma.done.wait [#allocation3], 256  }
  0x13   :  { %480 = vsyncadd [#allocation3], 4294967040 }
  0x14   :  { %481 = dma.done.wait [#allocation6], 1056  }
  0x15   :  { %482 = vsyncadd [#allocation6], 4294966240 }
  0x16   :  { %483 = dma.done.wait [#allocation9], 4096  }
  0x17   :  { %484 = vsyncadd [#allocation9], 4294963200  ;;  %v106_v0 = vld [vmem:[#allocation5 + $0x38] sm:$0xff]  ;;  %v104_v1 = vld [vmem:[#allocation5 + $0x28] sm:$0xff]  ;;  %vm113_vm0 = vcmask 261120   ;;  %s496_s2 = smov [#allocation11]  }
  0x18   :  { %155 = vmatpush.msra.mxu1 %v106_v0  ;;  %v102_v2 = vld [vmem:[#allocation5 + $0x18] sm:$0xff]  ;;  %v100_v3 = vld [vmem:[#allocation5 + $0x8] sm:$0xff]  ;;  %v551_v4 = vld [vmem:[#allocation2] sm:$0xff]  ;;  %s296_s4 = sshll.u32 %s496_s2, 4  ;;  %s298_s21 = sshll.u32 %s586_s5, 4  ;;  %s297_s4 = int_to_ptr.vmem [resolvable:$true] %s296_s4  ;;  %s299_s21 = int_to_ptr.hbm [resolvable:$true] %s298_s21 }
  0x19   :  { %v555_v5 = vld [vmem:[#allocation2 + $0x8] sm:$0xff]  ;;  %v559_v6 = vld [vmem:[#allocation7] sm:$0x3]  ;;  %v223_v14 = vld [vmem:[#allocation8 + $0x68] sm:$0xff] }
  0x1a   :  { %156 = vmatpush.msra.mxu1 %v104_v1  ;;  %v110_v7 = vperm.slane %v559_v6, 1  ;;  %v225_v12 = vld [vmem:[#allocation8 + $0x78] sm:$0xff]  ;;  %v224_v13 = vld [vmem:[#allocation8 + $0x70] sm:$0xff]  ;;  %v222_v15 = vld [vmem:[#allocation8 + $0x60] sm:$0xff] }
  0x1b   :  { %226 = vmatpush.msra.mxu2 %v225_v12  ;;  %v221_v16 = vld [vmem:[#allocation8 + $0x58] sm:$0xff]  ;;  %v220_v17 = vld [vmem:[#allocation8 + $0x50] sm:$0xff]  ;;  %v219_v26 = vld [vmem:[#allocation8 + $0x48] sm:$0xff] }
  0x1c   :  { %157 = vmatpush.msra.mxu1 %v102_v2  ;;  %v218_v27 = vld [vmem:[#allocation8 + $0x40] sm:$0xff]  ;;  %v217_v28 = vld [vmem:[#allocation8 + $0x38] sm:$0xff]  ;;  %v216_v29 = vld [vmem:[#allocation8 + $0x30] sm:$0xff] }
  0x1d   :  { %227 = vmatpush.msra.mxu2 %v224_v13  ;;  %v215_v30 = vld [vmem:[#allocation8 + $0x28] sm:$0xff]  ;;  %v214_v31 = vld [vmem:[#allocation8 + $0x20] sm:$0xff]  ;;  %v213_v32 = vld [vmem:[#allocation8 + $0x18] sm:$0xff] }
  0x1e   :  { %158 = vmatpush.msra.mxu1 %v100_v3  ;;  %v212_v33 = vld [vmem:[#allocation8 + $0x10] sm:$0xff]  ;;  %v211_v35 = vld [vmem:[#allocation8 + $0x8] sm:$0xff]  ;;  %v103_v36 = vld [vmem:[#allocation5 + $0x20] sm:$0xff] }
  0x1f   :  { %315 = vmatmul.msk.f32.vlgmr.msra.gmra.mxu1 %vm113_vm0, %v551_v4  ;;  %228 = vmatpush.msra.mxu2 %v223_v14  ;;  %v105_v34 = vld [vmem:[#allocation5 + $0x30] sm:$0xff]  ;;  %v210_v37 = vld [vmem:[#allocation8] sm:$0xff]  ;;  %v266_v40 = vld [vmem:[#allocation10 + $0x78] sm:$0xff] }
  0x20   :  { %132 = vmatpush.msra.mxu0 %v105_v34  ;;  %v101_v38 = vld [vmem:[#allocation5 + $0x10] sm:$0xff]  ;;  %v99_v39 = vld [vmem:[#allocation5] sm:$0xff]  ;;  %267 = vmatpush.msra.mxu3 %v266_v40 }
  0x21   :  { %229 = vmatpush.msra.mxu2 %v222_v15  ;;  %v265_v41 = vld [vmem:[#allocation10 + $0x70] sm:$0xff]  ;;  %v264_v42 = vld [vmem:[#allocation10 + $0x68] sm:$0xff]  ;;  %v263_v44 = vld [vmem:[#allocation10 + $0x60] sm:$0xff] }
  0x22   :  { %133 = vmatpush.msra.mxu0 %v103_v36  ;;  %268 = vmatpush.msra.mxu3 %v265_v41  ;;  %v262_v45 = vld [vmem:[#allocation10 + $0x58] sm:$0xff]  ;;  %v261_v46 = vld [vmem:[#allocation10 + $0x50] sm:$0xff]  ;;  %v260_v47 = vld [vmem:[#allocation10 + $0x48] sm:$0xff] }
  0x23   :  { %230 = vmatpush.msra.mxu2 %v221_v16  ;;  %v259_v51 = vld [vmem:[#allocation10 + $0x40] sm:$0xff]  ;;  %v258_v53 = vld [vmem:[#allocation10 + $0x38] sm:$0xff]  ;;  %v257_v57 = vld [vmem:[#allocation10 + $0x30] sm:$0xff] }
  0x24   :  { %134 = vmatpush.msra.mxu0 %v101_v38  ;;  %269 = vmatpush.msra.mxu3 %v264_v42  ;;  %v256_v59 = vld [vmem:[#allocation10 + $0x28] sm:$0xff]  ;;  %v255_v0 = vld [vmem:[#allocation10 + $0x20] sm:$0xff]  ;;  %v253_v14 = vld [vmem:[#allocation10 + $0x10] sm:$0xff] }
  0x25   :  { %231 = vmatpush.msra.mxu2 %v220_v17  ;;  %v252_v15 = vld [vmem:[#allocation10 + $0x8] sm:$0xff]  ;;  %v251_v16 = vld [vmem:[#allocation10] sm:$0xff] }
  0x26   :  { %135 = vmatpush.msra.mxu0 %v99_v39  ;;  %270 = vmatpush.msra.mxu3 %v263_v44 }
  0x27   :  { %316 = vmatmul.msk.f32.gmra.mxu1 %vm113_vm0, %v555_v5  ;;  %232 = vmatpush.msra.mxu2 %v219_v26 }
  0x28   :  { %313 = vmatmul.msk.f32.vlgmr.msra.gmra.mxu0 %vm113_vm0, %v551_v4  ;;  %271 = vmatpush.msra.mxu3 %v262_v45  ;;  %v254_v4 = vld [vmem:[#allocation10 + $0x18] sm:$0xff] }
  0x29   :  { %233 = vmatpush.msra.mxu2 %v218_v27 }
  0x2a   :  { %272 = vmatpush.msra.mxu3 %v261_v46 }
  0x2b   :  { %234 = vmatpush.msra.mxu2 %v217_v28 }
  0x2c   :  { %273 = vmatpush.msra.mxu3 %v260_v47 }
  0x2d   :  { %235 = vmatpush.msra.mxu2 %v216_v29 }
  0x2e   :  { %274 = vmatpush.msra.mxu3 %v259_v51 }
  0x2f   :  { %236 = vmatpush.msra.mxu2 %v215_v30 }
  0x30   :  { %314 = vmatmul.msk.f32.gmra.mxu0 %vm113_vm0, %v555_v5  ;;  %275 = vmatpush.msra.mxu3 %v258_v53 }
  0x31   :  { %237 = vmatpush.msra.mxu2 %v214_v31 }
  0x32   :  { %276 = vmatpush.msra.mxu3 %v257_v57 }
  0x33   :  { %238 = vmatpush.msra.mxu2 %v213_v32 }
  0x34   :  { %277 = vmatpush.msra.mxu3 %v256_v59 }
  0x35   :  { %239 = vmatpush.msra.mxu2 %v212_v33 }
  0x36   :  { %278 = vmatpush.msra.mxu3 %v255_v0 }
  0x37   :  { %240 = vmatpush.msra.mxu2 %v211_v35 }
  0x38   :  { %279 = vmatpush.msra.mxu3 %v254_v4 }
  0x39   :  { %241 = vmatpush.msra.mxu2 %v210_v37 }
  0x3a   :  { %280 = vmatpush.msra.mxu3 %v253_v14 }
  0x3c   :  { %281 = vmatpush.msra.mxu3 %v252_v15 }
  0x3e   :  { %282 = vmatpush.msra.mxu3 %v251_v16 }
  0x9c   :  { %v160_v8 = vpop.f32.mrf.mxu1 }
  0x9d   :  { %v161_v9 = vadd.f32 %v160_v8, %v110_v7 }
  0x9f   :  { %166 = vmax.xlane.f32.xlu0 %v161_v9 }
  0xa4   :  { %v163_v10 = vpop.f32.mrf.mxu1 }
  0xa5   :  { %v164_v11 = vadd.f32 %v163_v10, %v110_v7  ;;  %v137_v17 = vpop.f32.mrf.mxu0 }
  0xa7   :  { %168 = vmax.xlane.f32.xlu0 %v164_v11 }
 0x112   :  { %v167_v18 = vpop.xlane.xlu0 %166 }
 0x113   :  { %v170_v19 = vsub.f32 %v161_v9, %v167_v18  ;;  %v109_v18 = vperm.slane %v559_v6, 0 }
 0x115   :  { %v172_v20 = vmul.f32 1.442695, %v170_v19  ;;  %v138_v19 = vadd.f32 %v137_v17, %v109_v18 }
 0x117   :  { %327 = vpow2.f32 %v172_v20 }
 0x11a   :  { %v169_v21 = vpop.xlane.xlu0 %168 }
 0x11b   :  { %v171_v22 = vsub.f32 %v164_v11, %v169_v21 }
 0x11d   :  { %v562_v23 = vpop.eup %327  ;;  %v174_v24 = vmul.f32 1.442695, %v171_v22  ;;  %v140_v22 = vpop.f32.mrf.mxu0 }
 0x11e   :  { %176 = vadd.xlane.f32.xlu1 %v562_v23 }
 0x11f   :  { %329 = vpow2.f32 %v174_v24 }
 0x125   :  { %v565_v25 = vpop.eup %329 }
 0x126   :  { %178 = vadd.xlane.f32.xlu1 %v565_v25 }
 0x191   :  { %v177_v43 = vpop.xlane.xlu1 %176 }
 0x192   :  { %331 = vrcp.f32 %v177_v43  ;;  %v191_v54 = vand.u32 2147483648, %v177_v43  ;;  %v189_v56 = vand.u32 2147483647, %v177_v43  ;;  %vm185_vm2 = vweird.f32 %v177_v43 }
 0x194   :  { %v192_v61 = vor.u32 1.1754944e-38, %v191_v54  ;;  %vm190_vm4 = vcmp.eq.f32.partialorder %v189_v56, 8.507059e+37 }
 0x198   :  { %v332_v48 = vpop.eup %331 }
 0x199   :  { %v181_v49 = vmul.f32 %v332_v48, %v177_v43  ;;  %v179_v50 = vpop.xlane.xlu1 %178  ;;  %vm186_vm1 = vweird.f32 %v332_v48 }
 0x19a   :  { %333 = vrcp.f32 %v179_v50  ;;  %vm187_vm3 = vmor %vm185_vm2, %vm186_vm1  ;;  %v206_v5 = vand.u32 2147483648, %v179_v50  ;;  %v204_v8 = vand.u32 2147483647, %v179_v50  ;;  %vm200_vm6 = vweird.f32 %v179_v50 }
 0x19b   :  { %v182_v52 = vsub.f32 1.0, %v181_v49 }
 0x19c   :  { %v207_v10 = vor.u32 1.1754944e-38, %v206_v5  ;;  %vm205_vm8 = vcmp.eq.f32.partialorder %v204_v8, 8.507059e+37 }
 0x19d   :  { %v183_v55 = vmul.f32 %v332_v48, %v182_v52 }
 0x19f   :  { %v184_v58 = vadd.f32 %v332_v48, %v183_v55 }
 0x1a0   :  { %v334_v60 = vpop.eup %333 }
 0x1a1   :  { %v196_v62 = vmul.f32 %v334_v60, %v179_v50  ;;  %v188_v63 = vsel %vm187_vm3, %v332_v48, %v184_v58  ;;  %vm201_vm5 = vweird.f32 %v334_v60 }
 0x1a2   :  { %v193_v1 = vsel %vm190_vm4, %v192_v61, %v188_v63  ;;  %vm202_vm7 = vmor %vm200_vm6, %vm201_vm5 }
 0x1a3   :  { %v197_v2 = vsub.f32 1.0, %v196_v62  ;;  %v194_v3 = vmul.f32 %v562_v23, %v193_v1  ;;  %v141_v23 = vadd.f32 %v140_v22, %v109_v18 }
 0x1a5   :  { %v198_v7 = vmul.f32 %v334_v60, %v197_v2  ;;  %242 = vmatmul.f32.vlgmr.msra.gmra.mxu2 %v194_v3 }
 0x1a7   :  { %v199_v9 = vadd.f32 %v334_v60, %v198_v7 }
 0x1a9   :  { %v203_v11 = vsel %vm202_vm7, %v334_v60, %v199_v9 }
 0x1aa   :  { %v208_v12 = vsel %vm205_vm8, %v207_v10, %v203_v11 }
 0x1ab   :  { %v209_v13 = vmul.f32 %v565_v25, %v208_v12 }
 0x1ad   :  { %245 = vmatmul.f32.gmra.mxu2 %v209_v13 }
 0x228   :  { %v243_v20 = vpop.f32.mrf.mxu2 }
 0x229   :  { %v249_v21 = vmul.f32 %v243_v20, %v138_v19 }
 0x22b   :  { %283 = vmatmul.f32.vlgmr.msra.gmra.mxu3 %v249_v21 }
 0x230   :  { %v246_v24 = vpop.f32.mrf.mxu2 }
 0x231   :  { %v250_v26 = vmul.f32 %v246_v24, %v141_v23 }
 0x233   :  { %286 = vmatmul.f32.gmra.mxu3 %v250_v26 }
 0x2ae   :  { %v284_v25 = vpop.f32.mrf.mxu3 }
 0x2af   :  { %290 = vst [vmem:[#allocation11] sm:$0xff] %v284_v25 }
 0x2b6   :  { %v287_v6 = vpop.f32.mrf.mxu3 }
 0x2b7   :  { %291 = vst [vmem:[#allocation11 + $0x8] sm:$0xff] %v287_v6 }
 0x2b8   :  { %304 = dma.vmem_to_hbm [thread:$0]  %s297_s4, 256, %s299_s21, [#allocation4], %s491_s1, %s491_s1, %s492_s8  }
 0x2b9   :  { %485 = dma.done.wait [#allocation4], 256  }
 0x2ba   :  { %486 = vsyncadd [#allocation4], 4294967040 }
 0x2bb   :  { %309 = vsyncpa [#allocation3], 1 }
 0x2bc   :  { %310 = vsyncpa [#allocation6], 1 }
 0x2bd   :  { %311 = vsyncpa [#allocation9], 1 }
 0x2be   :  { %312 = vsyncpa [#allocation4], 1 }

</bundles_post_ra>
